<compile_context>
chip_gen: v5e
topology: v5e:2x2
jax: 0.10.0
libtpu: 0.0.40
codegen_flags: <defaults>
</compile_context>

<pallas_src>
import functools

import jax
import jax.numpy as jnp
from jax.experimental import pallas as pl
from jax.experimental.pallas import tpu as pltpu

N_SYMBOLS = 10
IN_FEATURES = 35


def _mlp_kernel(x_ref, w1_ref, b1_ref, w2_ref, b2_ref, o_ref):
    # fc1: (tb, 35) @ (35, H) + (1, H)  -> f32 accumulation on the MXU
    h = jnp.dot(x_ref[...], w1_ref[...], preferred_element_type=jnp.float32)
    # Sigmoid in f32 (EUP/VPU)
    h = jax.nn.sigmoid(h + b1_ref[...])
    # fc3: (tb, H) @ (H, 10) + (1, 10)  -> 10-wide output written directly
    out = jnp.dot(h, w2_ref[...], preferred_element_type=jnp.float32)
    o_ref[...] = (out + b2_ref[...]).astype(o_ref.dtype)


def _round_up(n, m):
    return ((n + m - 1) // m) * m


@functools.partial(jax.jit, static_argnames=("block_b",))
def network_forward(x, w1, b1, w2, b2, *, block_b=4096):
    """fc1 -> sigmoid -> fc3 in one batch-tiled Pallas kernel.

    x  : (B, 35)   float32
    w1 : (35, H)   float32   (transposed vs. torch's (H, 35))
    b1 : (1, H)    float32
    w2 : (H, 10)   float32   (transposed vs. torch's (10, H))
    b2 : (1, 10)   float32
    returns (B, 10) float32
    """
    B = x.shape[0]
    H = w1.shape[1]
    assert x.shape == (B, IN_FEATURES)
    assert w1.shape == (IN_FEATURES, H)
    assert b1.shape == (1, H)
    assert w2.shape == (H, N_SYMBOLS)
    assert b2.shape == (1, N_SYMBOLS)

    # Batch tile: multiple of 8 sublanes, capped at block_b rows, and capped at
    # ~ceil(B/2) so moderate batches still yield >= 2 grid steps (lets the
    # "parallel" batch axis shard across both TensorCores on v7x).
    tb = min(block_b, max(8, _round_up(pl.cdiv(B, 2), 8)))
    grid = (pl.cdiv(B, tb),)
    # Non-divisible final block: Pallas masks OOB output rows; OOB input rows
    # contain arbitrary data but rows are independent, so this is harmless.

    flops = 2 * B * (IN_FEATURES * H + H * N_SYMBOLS)
    bytes_accessed = 4 * (
        B * IN_FEATURES                      # x read
        + IN_FEATURES * H + H                # w1 + b1
        + H * N_SYMBOLS + N_SYMBOLS          # w2 + b2
        + B * N_SYMBOLS                      # output write
    )
    cost = pl.CostEstimate(
        flops=flops,
        transcendentals=B * H,               # sigmoid
        bytes_accessed=bytes_accessed,
    )

    return pl.pallas_call(
        _mlp_kernel,
        out_shape=jax.ShapeDtypeStruct((B, N_SYMBOLS), jnp.float32),
        grid=grid,
        in_specs=[
            # x: tiled over the batch -> auto double-buffered by the pipeliner.
            pl.BlockSpec((tb, IN_FEATURES), lambda i: (i, 0)),
            # Weights / biases: block index never changes across the grid, so
            # they are DMA'd once and stay resident in VMEM.
            pl.BlockSpec((IN_FEATURES, H), lambda i: (0, 0)),
            pl.BlockSpec((1, H), lambda i: (0, 0)),
            pl.BlockSpec((H, N_SYMBOLS), lambda i: (0, 0)),
            pl.BlockSpec((1, N_SYMBOLS), lambda i: (0, 0)),
        ],
        # 10-wide output block is legal (last dim equals the full array dim).
        out_specs=pl.BlockSpec((tb, N_SYMBOLS), lambda i: (i, 0)),
        compiler_params=pltpu.CompilerParams(
            dimension_semantics=("parallel",)),
        cost_estimate=cost,
    )(x, w1, b1, w2, b2)


def init_params(key, hidden_neurons):
    """PyTorch-style Linear init: U(-1/sqrt(fan_in), 1/sqrt(fan_in))."""
    k1, k2, k3, k4 = jax.random.split(key, 4)
    bound1 = 1.0 / (IN_FEATURES ** 0.5)
    bound2 = 1.0 / (hidden_neurons ** 0.5)
    w1 = jax.random.uniform(k1, (IN_FEATURES, hidden_neurons), jnp.float32,
                            minval=-bound1, maxval=bound1)
    b1 = jax.random.uniform(k2, (1, hidden_neurons), jnp.float32,
                            minval=-bound1, maxval=bound1)
    w2 = jax.random.uniform(k3, (hidden_neurons, N_SYMBOLS), jnp.float32,
                            minval=-bound2, maxval=bound2)
    b2 = jax.random.uniform(k4, (1, N_SYMBOLS), jnp.float32,
                            minval=-bound2, maxval=bound2)
    return w1, b1, w2, b2


def reference_forward(x, w1, b1, w2, b2):
    h = jax.nn.sigmoid(x @ w1 + b1)
    return h @ w2 + b2


if __name__ == "__main__":
    key = jax.random.PRNGKey(0)
    k_x, k_x2, k_p = jax.random.split(key, 3)

    hidden_neurons = 32
    w1, b1, w2, b2 = init_params(k_p, hidden_neurons)

    # Tiny batch (matches the module's typical use).
    batch = 8
    x = jax.random.normal(k_x, (batch, IN_FEATURES), jnp.float32)
    out = jax.block_until_ready(network_forward(x, w1, b1, w2, b2))
    ref = reference_forward(x, w1, b1, w2, b2)
    assert out.shape == (batch, N_SYMBOLS)
    assert jnp.allclose(out, ref, atol=1e-5, rtol=1e-5)

    # Larger batch: exercises multiple pipelined tiles and the non-divisible
    # final-block (masked OOB rows) path.
    batch2 = 1000
    x2 = jax.random.normal(k_x2, (batch2, IN_FEATURES), jnp.float32)
    out2 = jax.block_until_ready(network_forward(x2, w1, b1, w2, b2))
    ref2 = reference_forward(x2, w1, b1, w2, b2)
    assert out2.shape == (batch2, N_SYMBOLS)
    assert jnp.allclose(out2, ref2, atol=1e-5, rtol=1e-5)

    print("KERNEL_OK")
</pallas_src>

<mosaic_0001>
module attributes {stable_mosaic.version = 11 : i64} {
  func.func @_mlp_kernel(%arg0: i32, %arg1: memref<8x35xf32, #tpu.memory_space<vmem>>, %arg2: memref<35x32xf32, #tpu.memory_space<vmem>>, %arg3: memref<1x32xf32, #tpu.memory_space<vmem>>, %arg4: memref<32x10xf32, #tpu.memory_space<vmem>>, %arg5: memref<1x10xf32, #tpu.memory_space<vmem>>, %arg6: memref<8x10xf32, #tpu.memory_space<vmem>>) attributes {dimension_semantics = [#tpu.dimension_semantics<parallel>], iteration_bounds = array<i64: 1>, scalar_prefetch = 0 : i64, scratch_operands = 0 : i64, tpu.core_type = #tpu.core_type<tc>, window_params = [{transform_indices = @transform_0, window_bounds = array<i64: 8, 35>}, {pipeline_mode = #tpu.pipeline_mode<synchronous>, transform_indices = @transform_1, window_bounds = array<i64: 35, 32>}, {pipeline_mode = #tpu.pipeline_mode<synchronous>, transform_indices = @transform_2, window_bounds = array<i64: 1, 32>}, {pipeline_mode = #tpu.pipeline_mode<synchronous>, transform_indices = @transform_3, window_bounds = array<i64: 32, 10>}, {pipeline_mode = #tpu.pipeline_mode<synchronous>, transform_indices = @transform_4, window_bounds = array<i64: 1, 10>}, {transform_indices = @transform_5, window_bounds = array<i64: 8, 10>}]} {
    %c0 = arith.constant 0 : index
    %c0_0 = arith.constant 0 : index
    %0 = vector.load %arg1[%c0, %c0_0] : memref<8x35xf32, #tpu.memory_space<vmem>>, vector<8x35xf32>
    %c0_1 = arith.constant 0 : index
    %c0_2 = arith.constant 0 : index
    %1 = vector.load %arg2[%c0_1, %c0_2] : memref<35x32xf32, #tpu.memory_space<vmem>>, vector<35x32xf32>
    %cst = arith.constant dense<0.000000e+00> : vector<8x32xf32>
    %2 = tpu.matmul %0, %1, %cst {dimension_numbers = #tpu.dot_dimension_numbers<[1], [0], [0], [1], [0, 0, 1, 1], [], []>} : vector<8x35xf32>, vector<35x32xf32>, vector<8x32xf32> -> vector<8x32xf32>
    %c0_3 = arith.constant 0 : index
    %c0_4 = arith.constant 0 : index
    %3 = vector.load %arg3[%c0_3, %c0_4] : memref<1x32xf32, #tpu.memory_space<vmem>>, vector<1x32xf32>
    %4 = vector.broadcast %3 : vector<1x32xf32> to vector<8x32xf32>
    %5 = arith.addf %2, %4 : vector<8x32xf32>
    %6 = arith.negf %5 : vector<8x32xf32>
    %7 = math.exp %6 : vector<8x32xf32>
    %cst_5 = arith.constant 1.000000e+00 : f32
    %8 = vector.broadcast %cst_5 : f32 to vector<8x32xf32>
    %9 = arith.addf %8, %7 : vector<8x32xf32>
    %10 = arith.divf %8, %9 : vector<8x32xf32>
    %c0_6 = arith.constant 0 : index
    %c0_7 = arith.constant 0 : index
    %11 = vector.load %arg4[%c0_6, %c0_7] : memref<32x10xf32, #tpu.memory_space<vmem>>, vector<32x10xf32>
    %cst_8 = arith.constant dense<0.000000e+00> : vector<8x10xf32>
    %12 = tpu.matmul %10, %11, %cst_8 {dimension_numbers = #tpu.dot_dimension_numbers<[1], [0], [0], [1], [0, 0, 1, 1], [], []>} : vector<8x32xf32>, vector<32x10xf32>, vector<8x10xf32> -> vector<8x10xf32>
    %c0_9 = arith.constant 0 : index
    %c0_10 = arith.constant 0 : index
    %13 = vector.load %arg5[%c0_9, %c0_10] : memref<1x10xf32, #tpu.memory_space<vmem>>, vector<1x10xf32>
    %14 = vector.broadcast %13 : vector<1x10xf32> to vector<8x10xf32>
    %15 = arith.addf %12, %14 : vector<8x10xf32>
    %c0_11 = arith.constant 0 : index
    %c0_12 = arith.constant 0 : index
    %16 = vector.load %arg6[%c0_11, %c0_12] : memref<8x10xf32, #tpu.memory_space<vmem>>, vector<8x10xf32>
    tpu.vector_store %arg6[%c0_11, %c0_12], %15 {strides = array<i32>} : memref<8x10xf32, #tpu.memory_space<vmem>>, vector<8x10xf32>,
    return
  }
  func.func @transform_0(%arg0: i32) -> (i32, i32) {
    %c0_i32 = arith.constant 0 : i32
    %c0_i32_0 = arith.constant 0 : i32
    return %arg0, %c0_i32 : i32, i32
  }
  func.func @transform_1(%arg0: i32) -> (i32, i32) {
    %c0_i32 = arith.constant 0 : i32
    %c0_i32_0 = arith.constant 0 : i32
    %c0_i32_1 = arith.constant 0 : i32
    return %c0_i32, %c0_i32_0 : i32, i32
  }
  func.func @transform_2(%arg0: i32) -> (i32, i32) {
    %c0_i32 = arith.constant 0 : i32
    %c0_i32_0 = arith.constant 0 : i32
    %c0_i32_1 = arith.constant 0 : i32
    return %c0_i32, %c0_i32_0 : i32, i32
  }
  func.func @transform_3(%arg0: i32) -> (i32, i32) {
    %c0_i32 = arith.constant 0 : i32
    %c0_i32_0 = arith.constant 0 : i32
    %c0_i32_1 = arith.constant 0 : i32
    return %c0_i32, %c0_i32_0 : i32, i32
  }
  func.func @transform_4(%arg0: i32) -> (i32, i32) {
    %c0_i32 = arith.constant 0 : i32
    %c0_i32_0 = arith.constant 0 : i32
    %c0_i32_1 = arith.constant 0 : i32
    return %c0_i32, %c0_i32_0 : i32, i32
  }
  func.func @transform_5(%arg0: i32) -> (i32, i32) {
    %c0_i32 = arith.constant 0 : i32
    %c0_i32_0 = arith.constant 0 : i32
    return %arg0, %c0_i32 : i32, i32
  }
}

</mosaic_0001>

<bundles_post_ra>
// kernel: network_forward.1
= control target key start
LH: loop header
LB: loop body
LE: loop exit
PB: predicated region body
PF: predicated region fallthrough
CT: control target
= control target key end

     0   :  { %vm35_vm0 = vcmask 1042432   ;;  %s235_s0 = inlined_call_operand.vmem [shape: f32[8,35], index: 0, kind: input, shape index: {}]   ;;  %s236_s1 = inlined_call_operand.vmem [shape: f32[35,32], index: 1, kind: input, shape index: {}]   ;;  %s237_s2 = inlined_call_operand.vmem [shape: f32[1,32], index: 2, kind: input, shape index: {}]   ;;  %s238_s3 = inlined_call_operand.vmem [shape: f32[32,10], index: 3, kind: input, shape index: {}]   ;;  %s239_s4 = inlined_call_operand.vmem [shape: f32[1,10], index: 4, kind: input, shape index: {}]   ;;  %s240_s5 = inlined_call_operand.hbm [shape: f32[8,10], index: 5, kind: output, shape index: {}]  }
   0x1   :  { %v26_v0 = vld [vmem:[%s236_s1 + $0x20] sm:$0x7]  ;;  %v25_v1 = vld [vmem:[%s236_s1 + $0x18] sm:$0xff]  ;;  %v24_v2 = vld [vmem:[%s236_s1 + $0x10] sm:$0xff] }
   0x2   :  { %128 = vmatpush.msk.msra.mxu0 %vm35_vm0, %v26_v0 }
   0x4   :  { %51 = vmatpush.msra.mxu0 %v25_v1 }
   0x5   :  { %10 = vsyncpa [#allocation3], 0  ;;  %v23_v3 = vld [vmem:[%s236_s1 + $0x8] sm:$0xff]  ;;  %v22_v4 = vld [vmem:[%s236_s1] sm:$0xff]  ;;  %vm31_vm1 = vcmask 285696   ;;  %vm86_vm5 = vcmask 261120  }
   0x6   :  { %52 = vmatpush.msra.mxu0 %v24_v2  ;;  %v21_v5 = vld [vmem:[%s235_s0] sm:$0xff]  ;;  %v81_v6 = vld [vmem:[%s238_s3 + $0x18] sm:$0xff]  ;;  %v80_v7 = vld [vmem:[%s238_s3 + $0x10] sm:$0xff]  ;;  %s165_s13 = smov [#allocation2]   ;;  %s119_s17 = sshll.u32 %s240_s5, 4  ;;  %vm110_vm7 = vcmask 80896   ;;  %s120_s17 = int_to_ptr.hbm [resolvable:$true] %s119_s17 }
   0x7   :  { %102 = vmatpush.msra.mxu1 %v81_v6  ;;  %v79_v8 = vld [vmem:[%s238_s3 + $0x8] sm:$0xff]  ;;  %v78_v9 = vld [vmem:[%s238_s3] sm:$0xff]  ;;  %s117_s14 = sshll.u32 %s165_s13, 4  ;;  %s118_s14 = int_to_ptr.vmem [resolvable:$true] %s117_s14 }
   0x8   :  { %53 = vmatpush.msra.mxu0 %v23_v3  ;;  %v133_v10 = vld [vmem:[%s237_s2] ss:$0 sm:$0xff] }
   0x9   :  { %103 = vmatpush.msra.mxu1 %v80_v7  ;;  %v134_v26 = vld [vmem:[%s239_s4] ss:$0 sm:$0xff] }
   0xa   :  { %54 = vmatpush.msra.mxu0 %v22_v4 }
   0xb   :  { %129 = vmatmul.msk.f32.vlgmr.msra.gmra.mxu0 %vm31_vm1, %v21_v5  ;;  %104 = vmatpush.msra.mxu1 %v79_v8 }
   0xd   :  { %105 = vmatpush.msra.mxu1 %v78_v9 }
  0x88   :  { %v56_v11 = vpop.f32.mrf.mxu0 }
  0x89   :  { %v57_v12 = vadd.f32 %v133_v10, %v56_v11 }
  0x8b   :  { %v130_v13 = vmul.f32 -1.442695, %v57_v12 }
  0x8d   :  { %135 = vpow2.f32 %v130_v13 }
  0x93   :  { %v136_v14 = vpop.eup %135 }
  0x94   :  { %v62_v15 = vadd.f32 1.0, %v136_v14 }
  0x96   :  { %137 = vrcp.f32 %v62_v15  ;;  %v74_v19 = vand.u32 2147483648, %v62_v15  ;;  %v72_v21 = vand.u32 2147483647, %v62_v15  ;;  %vm68_vm3 = vweird.f32 %v62_v15 }
  0x98   :  { %v75_v23 = vor.u32 1.1754944e-38, %v74_v19  ;;  %vm73_vm6 = vcmp.eq.f32.partialorder %v72_v21, 8.507059e+37 }
  0x9c   :  { %v138_v16 = vpop.eup %137 }
  0x9d   :  { %v64_v17 = vmul.f32 %v138_v16, %v62_v15  ;;  %vm69_vm2 = vweird.f32 %v138_v16 }
  0x9e   :  { %vm70_vm4 = vmor %vm68_vm3, %vm69_vm2 }
  0x9f   :  { %v65_v18 = vsub.f32 1.0, %v64_v17 }
  0xa1   :  { %v66_v20 = vmul.f32 %v138_v16, %v65_v18 }
  0xa3   :  { %v67_v22 = vadd.f32 %v138_v16, %v66_v20 }
  0xa5   :  { %v71_v24 = vsel %vm70_vm4, %v138_v16, %v67_v22 }
  0xa6   :  { %v76_v25 = vsel %vm73_vm6, %v75_v23, %v71_v24 }
  0xa7   :  { %131 = vmatmul.msk.f32.vlgmr.msra.gmra.mxu1 %vm86_vm5, %v76_v25 }
 0x124   :  { %v107_v27 = vpop.f32.mrf.mxu1 }
 0x125   :  { %v108_v28 = vadd.f32 %v134_v26, %v107_v27 }
 0x127   :  { %111 = vst.msk [vmem:[#allocation2] sm:$0xff] %vm110_vm7, %v108_v28 }
 0x128   :  { %122 = dma.vmem_to_hbm [thread:$0]  %s118_s14, 128, %s120_s17, [#allocation3]  }
 0x129   :  { %163 = dma.done.wait [#allocation3], 128  }
 0x12a   :  { %164 = vsyncadd [#allocation3], 4294967168 }
 0x12b   :  { %127 = vsyncpa [#allocation3], 1 }

</bundles_post_ra>
